<compile_context>
chip_gen: v7x
topology: tpu7x:2x2x1
jax: 0.10.0
libtpu: 0.0.40
codegen_flags: <defaults>
</compile_context>

<pallas_src>
import functools

import jax
import jax.numpy as jnp
from jax import lax
from jax.experimental import pallas as pl
from jax.experimental.pallas import tpu as pltpu

EPS = 1e-5


def _conv3x3_mxu(y_f32, mask_f32, w_bf16, shifts):
    """3x3 'same' conv as a single deep-contraction MXU matmul.

    y_f32:    (Cp, L)       activations, L = N*H*W (lane-dense)
    mask_f32: (9*Cp, L)     0/1 border-validity mask per tap row (implements padding=1)
    w_bf16:   (Cp, 9*Cp)    packed weights (tap-major, channel-minor)
    shifts:   tuple of 9 static lane shifts (jnp.roll convention)
    returns   (Cp, L) float32
    """
    taps = [y_f32 if s == 0 else pltpu.roll(y_f32, shift=s, axis=1) for s in shifts]
    cols = jnp.concatenate(taps, axis=0) * mask_f32            # (9*Cp, L) f32
    return jnp.dot(w_bf16, cols.astype(jnp.bfloat16),
                   preferred_element_type=jnp.float32)         # (Cp, L) f32


def _batchnorm_train(y, gamma, beta):
    """Training-mode BatchNorm (biased variance) — per-channel reduce over lanes."""
    mean = jnp.mean(y, axis=1, keepdims=True)
    var = jnp.mean(jnp.square(y - mean), axis=1, keepdims=True)
    return (y - mean) * (gamma * lax.rsqrt(var + EPS)) + beta


def _basic_block_kernel(shifts, x_ref, mask_ref, w1_ref, g1_ref, b1_ref,
                        w2_ref, g2_ref, b2_ref, out_ref):
    x = x_ref[...]                        # (Cp, L) f32 — conv1 input and residual
    mask = mask_ref[...]                  # (9*Cp, L) f32

    y = _conv3x3_mxu(x, mask, w1_ref[...], shifts)                      # conv1
    y = jnp.maximum(_batchnorm_train(y, g1_ref[...], b1_ref[...]), 0.0)  # bn1 + relu

    y = _conv3x3_mxu(y, mask, w2_ref[...], shifts)                      # conv2
    y = _batchnorm_train(y, g2_ref[...], b2_ref[...])                   # bn2

    out_ref[...] = jnp.maximum(y + x, 0.0)                              # residual + relu


def basic_block(x_nchw, w1, gamma1, beta1, w2, gamma2, beta2):
    """x_nchw: (N, C, H, W);  w*: (Cout, Cin, 3, 3) PyTorch layouts."""
    N, C, H, W = x_nchw.shape
    assert w1.shape[0] == C, "stride=1, downsample=None requires inplanes == planes"
    L = N * H * W
    CP = ((C + 7) // 8) * 8               # pad channels to a full sublane tile

    # ---- wrapper glue: channels-first, lane-dense (CP, N*H*W) layout ----
    xf = jnp.transpose(x_nchw, (1, 0, 2, 3)).reshape(C, L).astype(jnp.float32)
    xfp = jnp.pad(xf, ((0, CP - C), (0, 0)))

    def pack_w(w):  # (Cout, Cin, 3, 3) -> (CP, 9*CP) bf16, tap-major / channel-minor
        wt = jnp.transpose(w, (0, 2, 3, 1)).astype(jnp.float32)          # (Co,3,3,Ci)
        wt = jnp.pad(wt, ((0, CP - C), (0, 0), (0, 0), (0, CP - C)))
        return wt.reshape(CP, 9 * CP).astype(jnp.bfloat16)

    def pack_p(p):  # (C,) -> (CP, 1) f32, zero-padded channels stay exactly zero
        return jnp.pad(p.astype(jnp.float32), (0, CP - C)).reshape(CP, 1)

    w1p, w2p = pack_w(w1), pack_w(w2)
    g1, b1 = pack_p(gamma1), pack_p(beta1)
    g2, b2 = pack_p(gamma2), pack_p(beta2)

    # ---- static tap shifts + 0/1 border masks (implements zero padding=1) ----
    p = jnp.arange(L, dtype=jnp.int32)
    i = (p // W) % H
    j = p % W
    shifts, rows = [], []
    for di in (-1, 0, 1):
        for dj in (-1, 0, 1):
            shifts.append((-(di * W + dj)) % L)          # jnp.roll convention
            rows.append((i + di >= 0) & (i + di < H) & (j + dj >= 0) & (j + dj < W))
    mask = jnp.repeat(jnp.stack(rows, axis=0).astype(jnp.float32), CP, axis=0)

    vmem = pl.BlockSpec(memory_space=pltpu.MemorySpace.VMEM)
    flops = 2 * (2 * CP * 9 * CP * L)                    # two 3x3 convs as matmuls
    bytes_accessed = int(4 * (xfp.size + mask.size + CP * L)
                         + 2 * (w1p.size + w2p.size) + 4 * 4 * CP)

    out_flat = pl.pallas_call(
        functools.partial(_basic_block_kernel, tuple(shifts)),
        out_shape=jax.ShapeDtypeStruct((CP, L), jnp.float32),
        in_specs=[vmem] * 8,
        out_specs=vmem,
        compiler_params=pltpu.CompilerParams(vmem_limit_bytes=32 * 1024 * 1024),
        cost_estimate=pl.CostEstimate(flops=flops, transcendentals=2 * CP,
                                      bytes_accessed=bytes_accessed),
    )(xfp, mask, w1p, g1, b1, w2p, g2, b2)

    return jnp.transpose(out_flat[:C].reshape(C, N, H, W), (1, 0, 2, 3))  # -> NCHW


def basic_block_reference(x_nchw, w1, gamma1, beta1, w2, gamma2, beta2,
                          conv_dtype=jnp.bfloat16):
    """Pure-JAX reference.  conv_dtype=bf16 mirrors the kernel's MXU operand precision
    (accumulation stays f32); conv_dtype=f32 gives exact PyTorch float32 semantics."""
    def conv(x_nhwc, w_oihw):
        w_hwio = jnp.transpose(w_oihw, (2, 3, 1, 0)).astype(conv_dtype)
        return lax.conv_general_dilated(
            x_nhwc.astype(conv_dtype), w_hwio, window_strides=(1, 1), padding="SAME",
            dimension_numbers=("NHWC", "HWIO", "NHWC"),
            preferred_element_type=jnp.float32)

    def bn(y, g, b):
        m = jnp.mean(y, axis=(0, 1, 2), keepdims=True)
        v = jnp.mean((y - m) ** 2, axis=(0, 1, 2), keepdims=True)
        return (y - m) / jnp.sqrt(v + EPS) * g.reshape(1, 1, 1, -1) + \
            b.reshape(1, 1, 1, -1)

    x_nhwc = jnp.transpose(x_nchw, (0, 2, 3, 1)).astype(jnp.float32)
    o = jnp.maximum(bn(conv(x_nhwc, w1), gamma1, beta1), 0.0)
    o = bn(conv(o, w2), gamma2, beta2)
    o = jnp.maximum(o + x_nhwc, 0.0)
    return jnp.transpose(o, (0, 3, 1, 2))


if __name__ == "__main__":
    # BasicBlock(inplanes=4, planes=4, stride=1, downsample=None)
    N, C, H, W = 2, 4, 16, 16
    planes = C

    key = jax.random.PRNGKey(0)
    kx, kw1, kw2, kg1, kb1, kg2, kb2 = jax.random.split(key, 7)

    x = jax.random.normal(kx, (N, C, H, W), dtype=jnp.float32)
    w1 = 0.1 * jax.random.normal(kw1, (planes, C, 3, 3), dtype=jnp.float32)
    w2 = 0.1 * jax.random.normal(kw2, (planes, planes, 3, 3), dtype=jnp.float32)
    gamma1 = 1.0 + 0.1 * jax.random.normal(kg1, (planes,), dtype=jnp.float32)
    beta1 = 0.1 * jax.random.normal(kb1, (planes,), dtype=jnp.float32)
    gamma2 = 1.0 + 0.1 * jax.random.normal(kg2, (planes,), dtype=jnp.float32)
    beta2 = 0.1 * jax.random.normal(kb2, (planes,), dtype=jnp.float32)

    out = jax.block_until_ready(basic_block(x, w1, gamma1, beta1, w2, gamma2, beta2))
    assert out.shape == (N, C, H, W)

    # Tight check vs. a reference with matching MXU-operand precision (bf16 operands,
    # f32 accumulation) ...
    ref_bf16 = jax.block_until_ready(
        basic_block_reference(x, w1, gamma1, beta1, w2, gamma2, beta2))
    assert jnp.allclose(out, ref_bf16, atol=5e-3, rtol=5e-3), (
        float(jnp.max(jnp.abs(out - ref_bf16))))

    # ... and a looser sanity check vs. exact float32 PyTorch semantics.
    ref_f32 = jax.block_until_ready(
        basic_block_reference(x, w1, gamma1, beta1, w2, gamma2, beta2,
                              conv_dtype=jnp.float32))
    assert jnp.allclose(out, ref_f32, atol=1e-1, rtol=1e-1), (
        float(jnp.max(jnp.abs(out - ref_f32))))

    print("KERNEL_OK")
</pallas_src>

<mosaic_0001>
module attributes {stable_mosaic.version = 11 : i64} {
  func.func @_basic_block_kernel(%arg0: memref<8x512xf32, #tpu.memory_space<vmem>>, %arg1: memref<72x512xf32, #tpu.memory_space<vmem>>, %arg2: memref<8x72xbf16, #tpu.memory_space<vmem>>, %arg3: memref<8x1xf32, #tpu.memory_space<vmem>>, %arg4: memref<8x1xf32, #tpu.memory_space<vmem>>, %arg5: memref<8x72xbf16, #tpu.memory_space<vmem>>, %arg6: memref<8x1xf32, #tpu.memory_space<vmem>>, %arg7: memref<8x1xf32, #tpu.memory_space<vmem>>, %arg8: memref<8x512xf32, #tpu.memory_space<vmem>>) attributes {dimension_semantics = [], scalar_prefetch = 0 : i64, scratch_operands = 0 : i64, tpu.core_type = #tpu.core_type<tc>} {
    %c0 = arith.constant 0 : index
    %c0_0 = arith.constant 0 : index
    %0 = vector.load %arg0[%c0, %c0_0] : memref<8x512xf32, #tpu.memory_space<vmem>>, vector<8x512xf32>
    %c0_1 = arith.constant 0 : index
    %c0_2 = arith.constant 0 : index
    %1 = vector.load %arg1[%c0_1, %c0_2] : memref<72x512xf32, #tpu.memory_space<vmem>>, vector<72x512xf32>
    %c0_3 = arith.constant 0 : index
    %c0_4 = arith.constant 0 : index
    %2 = vector.load %arg2[%c0_3, %c0_4] : memref<8x72xbf16, #tpu.memory_space<vmem>>, vector<8x72xbf16>
    %c17_i32 = arith.constant 17 : i32
    %3 = tpu.dynamic_rotate %0 by %c17_i32 dim 1 : vector<8x512xf32>, i32 -> vector<8x512xf32>
    %c16_i32 = arith.constant 16 : i32
    %4 = tpu.dynamic_rotate %0 by %c16_i32 dim 1 : vector<8x512xf32>, i32 -> vector<8x512xf32>
    %c15_i32 = arith.constant 15 : i32
    %5 = tpu.dynamic_rotate %0 by %c15_i32 dim 1 : vector<8x512xf32>, i32 -> vector<8x512xf32>
    %c1_i32 = arith.constant 1 : i32
    %6 = tpu.dynamic_rotate %0 by %c1_i32 dim 1 : vector<8x512xf32>, i32 -> vector<8x512xf32>
    %c511_i32 = arith.constant 511 : i32
    %7 = tpu.dynamic_rotate %0 by %c511_i32 dim 1 : vector<8x512xf32>, i32 -> vector<8x512xf32>
    %c497_i32 = arith.constant 497 : i32
    %8 = tpu.dynamic_rotate %0 by %c497_i32 dim 1 : vector<8x512xf32>, i32 -> vector<8x512xf32>
    %c496_i32 = arith.constant 496 : i32
    %9 = tpu.dynamic_rotate %0 by %c496_i32 dim 1 : vector<8x512xf32>, i32 -> vector<8x512xf32>
    %c495_i32 = arith.constant 495 : i32
    %10 = tpu.dynamic_rotate %0 by %c495_i32 dim 1 : vector<8x512xf32>, i32 -> vector<8x512xf32>
    %11 = tpu.concatenate %3, %4, %5, %6, %0, %7, %8, %9, %10 in 0 : vector<8x512xf32>, vector<8x512xf32>, vector<8x512xf32>, vector<8x512xf32>, vector<8x512xf32>, vector<8x512xf32>, vector<8x512xf32>, vector<8x512xf32>, vector<8x512xf32> -> vector<72x512xf32>
    %12 = arith.mulf %11, %1 : vector<72x512xf32>
    %13 = arith.truncf %12 : vector<72x512xf32> to vector<72x512xbf16>
    %cst = arith.constant dense<0.000000e+00> : vector<8x512xf32>
    %14 = tpu.matmul %2, %13, %cst {dimension_numbers = #tpu.dot_dimension_numbers<[1], [0], [0], [1], [0, 0, 1, 1], [], []>} : vector<8x72xbf16>, vector<72x512xbf16>, vector<8x512xf32> -> vector<8x512xf32>
    %c0_5 = arith.constant 0 : index
    %c0_6 = arith.constant 0 : index
    %15 = vector.load %arg3[%c0_5, %c0_6] : memref<8x1xf32, #tpu.memory_space<vmem>>, vector<8x1xf32>
    %c0_7 = arith.constant 0 : index
    %c0_8 = arith.constant 0 : index
    %16 = vector.load %arg4[%c0_7, %c0_8] : memref<8x1xf32, #tpu.memory_space<vmem>>, vector<8x1xf32>
    %cst_9 = arith.constant dense<0.000000e+00> : vector<8xf32>
    %17 = vector.multi_reduction <add>, %14, %cst_9 [1] : vector<8x512xf32> to vector<8xf32>
    %18 = vector.shape_cast %17 : vector<8xf32> to vector<8x1xf32>
    %cst_10 = arith.constant 5.120000e+02 : f32
    %19 = vector.broadcast %cst_10 : f32 to vector<8x1xf32>
    %20 = arith.divf %18, %19 : vector<8x1xf32>
    %21 = vector.broadcast %20 : vector<8x1xf32> to vector<8x512xf32>
    %22 = arith.subf %14, %21 : vector<8x512xf32>
    %23 = arith.mulf %22, %22 : vector<8x512xf32>
    %cst_11 = arith.constant dense<0.000000e+00> : vector<8xf32>
    %24 = vector.multi_reduction <add>, %23, %cst_11 [1] : vector<8x512xf32> to vector<8xf32>
    %25 = vector.shape_cast %24 : vector<8xf32> to vector<8x1xf32>
    %cst_12 = arith.constant 5.120000e+02 : f32
    %26 = vector.broadcast %cst_12 : f32 to vector<8x1xf32>
    %27 = arith.divf %25, %26 : vector<8x1xf32>
    %28 = vector.broadcast %20 : vector<8x1xf32> to vector<8x512xf32>
    %29 = arith.subf %14, %28 : vector<8x512xf32>
    %cst_13 = arith.constant 9.99999974E-6 : f32
    %30 = vector.broadcast %cst_13 : f32 to vector<8x1xf32>
    %31 = arith.addf %27, %30 : vector<8x1xf32>
    %32 = math.rsqrt %31 : vector<8x1xf32>
    %33 = arith.mulf %15, %32 : vector<8x1xf32>
    %34 = vector.broadcast %33 : vector<8x1xf32> to vector<8x512xf32>
    %35 = arith.mulf %29, %34 : vector<8x512xf32>
    %36 = vector.broadcast %16 : vector<8x1xf32> to vector<8x512xf32>
    %37 = arith.addf %35, %36 : vector<8x512xf32>
    %cst_14 = arith.constant 0.000000e+00 : f32
    %38 = vector.broadcast %cst_14 : f32 to vector<8x512xf32>
    %39 = arith.maximumf %37, %38 : vector<8x512xf32>
    %c0_15 = arith.constant 0 : index
    %c0_16 = arith.constant 0 : index
    %40 = vector.load %arg5[%c0_15, %c0_16] : memref<8x72xbf16, #tpu.memory_space<vmem>>, vector<8x72xbf16>
    %c17_i32_17 = arith.constant 17 : i32
    %41 = tpu.dynamic_rotate %39 by %c17_i32_17 dim 1 : vector<8x512xf32>, i32 -> vector<8x512xf32>
    %c16_i32_18 = arith.constant 16 : i32
    %42 = tpu.dynamic_rotate %39 by %c16_i32_18 dim 1 : vector<8x512xf32>, i32 -> vector<8x512xf32>
    %c15_i32_19 = arith.constant 15 : i32
    %43 = tpu.dynamic_rotate %39 by %c15_i32_19 dim 1 : vector<8x512xf32>, i32 -> vector<8x512xf32>
    %c1_i32_20 = arith.constant 1 : i32
    %44 = tpu.dynamic_rotate %39 by %c1_i32_20 dim 1 : vector<8x512xf32>, i32 -> vector<8x512xf32>
    %c511_i32_21 = arith.constant 511 : i32
    %45 = tpu.dynamic_rotate %39 by %c511_i32_21 dim 1 : vector<8x512xf32>, i32 -> vector<8x512xf32>
    %c497_i32_22 = arith.constant 497 : i32
    %46 = tpu.dynamic_rotate %39 by %c497_i32_22 dim 1 : vector<8x512xf32>, i32 -> vector<8x512xf32>
    %c496_i32_23 = arith.constant 496 : i32
    %47 = tpu.dynamic_rotate %39 by %c496_i32_23 dim 1 : vector<8x512xf32>, i32 -> vector<8x512xf32>
    %c495_i32_24 = arith.constant 495 : i32
    %48 = tpu.dynamic_rotate %39 by %c495_i32_24 dim 1 : vector<8x512xf32>, i32 -> vector<8x512xf32>
    %49 = tpu.concatenate %41, %42, %43, %44, %39, %45, %46, %47, %48 in 0 : vector<8x512xf32>, vector<8x512xf32>, vector<8x512xf32>, vector<8x512xf32>, vector<8x512xf32>, vector<8x512xf32>, vector<8x512xf32>, vector<8x512xf32>, vector<8x512xf32> -> vector<72x512xf32>
    %50 = arith.mulf %49, %1 : vector<72x512xf32>
    %51 = arith.truncf %50 : vector<72x512xf32> to vector<72x512xbf16>
    %cst_25 = arith.constant dense<0.000000e+00> : vector<8x512xf32>
    %52 = tpu.matmul %40, %51, %cst_25 {dimension_numbers = #tpu.dot_dimension_numbers<[1], [0], [0], [1], [0, 0, 1, 1], [], []>} : vector<8x72xbf16>, vector<72x512xbf16>, vector<8x512xf32> -> vector<8x512xf32>
    %c0_26 = arith.constant 0 : index
    %c0_27 = arith.constant 0 : index
    %53 = vector.load %arg6[%c0_26, %c0_27] : memref<8x1xf32, #tpu.memory_space<vmem>>, vector<8x1xf32>
    %c0_28 = arith.constant 0 : index
    %c0_29 = arith.constant 0 : index
    %54 = vector.load %arg7[%c0_28, %c0_29] : memref<8x1xf32, #tpu.memory_space<vmem>>, vector<8x1xf32>
    %cst_30 = arith.constant dense<0.000000e+00> : vector<8xf32>
    %55 = vector.multi_reduction <add>, %52, %cst_30 [1] : vector<8x512xf32> to vector<8xf32>
    %56 = vector.shape_cast %55 : vector<8xf32> to vector<8x1xf32>
    %cst_31 = arith.constant 5.120000e+02 : f32
    %57 = vector.broadcast %cst_31 : f32 to vector<8x1xf32>
    %58 = arith.divf %56, %57 : vector<8x1xf32>
    %59 = vector.broadcast %58 : vector<8x1xf32> to vector<8x512xf32>
    %60 = arith.subf %52, %59 : vector<8x512xf32>
    %61 = arith.mulf %60, %60 : vector<8x512xf32>
    %cst_32 = arith.constant dense<0.000000e+00> : vector<8xf32>
    %62 = vector.multi_reduction <add>, %61, %cst_32 [1] : vector<8x512xf32> to vector<8xf32>
    %63 = vector.shape_cast %62 : vector<8xf32> to vector<8x1xf32>
    %cst_33 = arith.constant 5.120000e+02 : f32
    %64 = vector.broadcast %cst_33 : f32 to vector<8x1xf32>
    %65 = arith.divf %63, %64 : vector<8x1xf32>
    %66 = vector.broadcast %58 : vector<8x1xf32> to vector<8x512xf32>
    %67 = arith.subf %52, %66 : vector<8x512xf32>
    %cst_34 = arith.constant 9.99999974E-6 : f32
    %68 = vector.broadcast %cst_34 : f32 to vector<8x1xf32>
    %69 = arith.addf %65, %68 : vector<8x1xf32>
    %70 = math.rsqrt %69 : vector<8x1xf32>
    %71 = arith.mulf %53, %70 : vector<8x1xf32>
    %72 = vector.broadcast %71 : vector<8x1xf32> to vector<8x512xf32>
    %73 = arith.mulf %67, %72 : vector<8x512xf32>
    %74 = vector.broadcast %54 : vector<8x1xf32> to vector<8x512xf32>
    %75 = arith.addf %73, %74 : vector<8x512xf32>
    %76 = arith.addf %75, %0 : vector<8x512xf32>
    %cst_35 = arith.constant 0.000000e+00 : f32
    %77 = vector.broadcast %cst_35 : f32 to vector<8x512xf32>
    %78 = arith.maximumf %76, %77 : vector<8x512xf32>
    %c0_36 = arith.constant 0 : index
    %c0_37 = arith.constant 0 : index
    %79 = vector.load %arg8[%c0_36, %c0_37] : memref<8x512xf32, #tpu.memory_space<vmem>>, vector<8x512xf32>
    tpu.vector_store %arg8[%c0_36, %c0_37], %78 {strides = array<i32>} : memref<8x512xf32, #tpu.memory_space<vmem>>, vector<8x512xf32>,
    return
  }
}

</mosaic_0001>

<bundles_post_ra>
// kernel: tpu_custom_call.1
= control target key start
LH: loop header
LB: loop body
LE: loop exit
PB: predicated region body
PF: predicated region fallthrough
CT: control target
= control target key end

     0   :  { %13 = vsyncpa [#allocation3], 0  ;;  %s1367_s0 = inlined_call_operand.vmem [shape: f32[8,512], index: 0, kind: input, shape index: {}]   ;;  %s1368_s1 = inlined_call_operand.hbm [shape: f32[72,512], index: 1, kind: input, shape index: {}]   ;;  %s1369_s2 = inlined_call_operand.vmem [shape: bf16[8,72], index: 2, kind: input, shape index: {}]   ;;  %s1370_s3 = inlined_call_operand.vmem [shape: f32[8,1], index: 3, kind: input, shape index: {}]   ;;  %s1371_s4 = inlined_call_operand.vmem [shape: f32[8,1], index: 4, kind: input, shape index: {}]   ;;  %s1372_s5 = inlined_call_operand.vmem [shape: bf16[8,72], index: 5, kind: input, shape index: {}]   ;;  %s1373_s6 = inlined_call_operand.vmem [shape: f32[8,1], index: 6, kind: input, shape index: {}]   ;;  %s1374_s7 = inlined_call_operand.vmem [shape: f32[8,1], index: 7, kind: input, shape index: {}]   ;;  %s1375_s8 = inlined_call_operand.hbm [shape: f32[8,512], index: 8, kind: output, shape index: {}]  }
   0x1   :  { %14 = vsyncpa [#allocation4], 0  ;;  %s793_s27 = smov [#allocation2]   ;;  %s745_s9 = scalar_lea.hbm %s1368_s1, 4608 }
   0x2   :  { %s22_s28 = sshll.u32 %s793_s27, 4  ;;  %p746_p0 = scmp.ne.s32.totalorder %s1368_s1, %s745_s9  ;;  %s23_s28 = int_to_ptr.vmem [resolvable:$true] %s22_s28 }
   0x3   :  { %p749_p1 = scmp.lt.u32.totalorder %s745_s9, %s1368_s1 }
   0x5   :  { %p751_p2 = pnand %p749_p1, %p746_p0 }
   0x7   :  { %754 = shalt.err (!%p751_p2)
}
   0x8   :  { %s755_s14 = scalar_lea.vmem %s23_s28, 4608  ;;  %p760_p4 = scmp.lt.s32.totalorder %s23_s28, %s23_s28 }
   0x9   :  { %p756_p3 = scmp.ne.s32.totalorder %s23_s28, %s755_s14  ;;  %p761_p5 = scmp.lt.s32.totalorder %s755_s14, %s755_s14 }
   0xb   :  { %p762_p6 = por %p761_p5, %p760_p4 }
   0xd   :  { %p763_p7 = pnand %p762_p6, %p756_p3 }
   0xf   :  { %766 = shalt.err (!%p763_p7)
}
  0x10   :  { %s794_s15 = smov 512   ;;  %s795_s16 = smov 32  }
  0x11   :  { %28 = dma.hbm_to_vmem [thread:$0]  %s1368_s1, 4608, %s23_s28, [#allocation3], %s794_s15, %s794_s15, %s795_s16  }
  0x12   :  { %789 = dma.done.wait [#allocation3], 4608  }
  0x13   :  { %790 = vsyncadd [#allocation3], 4294962688  ;;  %v866_v0 = vld [vmem:[%s1367_s0] sm:$0xff]  ;;  %s796_s21 = smov 16   ;;  %s797_s22 = smov 17   ;;  %v875_v1 = vld [vmem:[%s1367_s0 + $0x8] sm:$0xff]  ;;  %v94_v5 = vlaneseq }
  0x14   :  { %101 = vrot.lane.b32.xlu1 %v866_v0, %s796_s21  ;;  %86 = vrot.lane.b32.xlu0 %v866_v0, %s797_s22  ;;  %v884_v2 = vld [vmem:[%s1367_s0 + $0x18] sm:$0xff]  ;;  %v893_v3 = vld [vmem:[%s1367_s0 + $0x10] sm:$0xff]  ;;  %s798_s28 = smov 15   ;;  %s799_s29 = smov 1   ;;  %v803_v4 = vmov 0   ;;  %v955_v9 = vld [vmem:[#allocation2 + $0x8] sm:$0xff] }
  0x15   :  { %s800_s30 = smov 127   ;;  %s801_s9 = smov 113   ;;  %297 = vmatprep.mubr.bf16.mxu0 %v803_v4  ;;  %338 = vmatprep.mubr.bf16.mxu1 %v803_v4  ;;  %v951_v6 = vand.u32 127, %v94_v5  ;;  %v957_v10 = vld [vmem:[#allocation2 + $0x28] sm:$0xff]  ;;  %v965_v17 = vld [vmem:[#allocation2 + $0x20] sm:$0xff]  ;;  %v975_v26 = vld [vmem:[#allocation2 + $0x30] sm:$0xff] }
  0x16   :  { %s802_s10 = smov 112   ;;  %736 = vset.pattern.permute.xlu0 %v803_v4  ;;  %737 = vset.pattern.permute.xlu1 %v803_v4  ;;  %s804_s11 = smov 111   ;;  %v967_v18 = vld [vmem:[#allocation2] sm:$0xff]  ;;  %v977_v27 = vld [vmem:[#allocation2 + $0x10] sm:$0xff]  ;;  %v979_v28 = vld [vmem:[#allocation2 + $0x18] sm:$0xff]  ;;  %vm252_vm8 = vcmask 1043456  }
  0x17   :  { %vm109_vm0 = vcmp.lt.s32.totalorder %v951_v6, 16  ;;  %vm96_vm1 = vcmp.lt.s32.totalorder %v951_v6, 17  ;;  %v981_v29 = vld [vmem:[#allocation2 + $0x38] sm:$0xff]  ;;  %vm122_vm2 = vcmp.lt.s32.totalorder %v951_v6, 15  ;;  %vm135_vm3 = vcmp.lt.s32.totalorder %v951_v6, 1  ;;  %v997_v45 = vld [vmem:[#allocation2 + $0x48] sm:$0xff] }
  0x18   :  { %103 = vrot.lane.b32.xlu1 %v875_v1, %s796_s21  ;;  %88 = vrot.lane.b32.xlu0 %v875_v1, %s797_s22  ;;  %v1001_v47 = vld [vmem:[#allocation2 + $0x68] sm:$0xff]  ;;  %v1007_v53 = vld [vmem:[#allocation2 + $0x60] sm:$0xff]  ;;  %v1017_v62 = vld [vmem:[#allocation2 + $0x70] sm:$0xff]  ;;  %vm148_vm4 = vcmp.lt.s32.totalorder %v951_v6, 127  ;;  %vm161_vm5 = vcmp.lt.s32.totalorder %v951_v6, 113  ;;  %vm174_vm6 = vcmp.lt.s32.totalorder %v951_v6, 112 }
  0x19   :  { %v1009_v54 = vld [vmem:[#allocation2 + $0x40] sm:$0xff]  ;;  %v1019_v63 = vld [vmem:[#allocation2 + $0x78] sm:$0xff]  ;;  %v1021_v5 = vld [vmem:[#allocation2 + $0x50] sm:$0xff]  ;;  %vm187_vm7 = vcmp.lt.s32.totalorder %v951_v6, 111  ;;  %vm248_vm9 = vcmask 588800  }
  0x1c   :  { %107 = vrot.lane.b32.xlu1 %v884_v2, %s796_s21  ;;  %92 = vrot.lane.b32.xlu0 %v884_v2, %s797_s22 }
  0x20   :  { %105 = vrot.lane.b32.xlu1 %v893_v3, %s796_s21  ;;  %90 = vrot.lane.b32.xlu0 %v893_v3, %s797_s22 }
  0x24   :  { %116 = vrot.lane.b32.xlu1 %v875_v1, %s798_s28  ;;  %114 = vrot.lane.b32.xlu0 %v866_v0, %s798_s28 }
  0x28   :  { %129 = vrot.lane.b32.xlu1 %v875_v1, %s799_s29  ;;  %127 = vrot.lane.b32.xlu0 %v866_v0, %s799_s29 }
  0x2c   :  { %133 = vrot.lane.b32.xlu1 %v884_v2, %s799_s29  ;;  %120 = vrot.lane.b32.xlu0 %v884_v2, %s798_s28 }
  0x30   :  { %131 = vrot.lane.b32.xlu1 %v893_v3, %s799_s29  ;;  %118 = vrot.lane.b32.xlu0 %v893_v3, %s798_s28 }
  0x34   :  { %144 = vrot.lane.b32.xlu1 %v893_v3, %s800_s30  ;;  %142 = vrot.lane.b32.xlu0 %v875_v1, %s800_s30 }
  0x38   :  { %146 = vrot.lane.b32.xlu1 %v884_v2, %s800_s30  ;;  %140 = vrot.lane.b32.xlu0 %v866_v0, %s800_s30 }
  0x3c   :  { %157 = vrot.lane.b32.xlu1 %v893_v3, %s801_s9  ;;  %155 = vrot.lane.b32.xlu0 %v875_v1, %s801_s9 }
  0x40   :  { %170 = vrot.lane.b32.xlu1 %v893_v3, %s802_s10  ;;  %168 = vrot.lane.b32.xlu0 %v875_v1, %s802_s10 }
  0x44   :  { %166 = vrot.lane.b32.xlu1 %v866_v0, %s802_s10  ;;  %153 = vrot.lane.b32.xlu0 %v866_v0, %s801_s9 }
  0x48   :  { %172 = vrot.lane.b32.xlu1 %v884_v2, %s802_s10  ;;  %159 = vrot.lane.b32.xlu0 %v884_v2, %s801_s9 }
  0x4c   :  { %181 = vrot.lane.b32.xlu1 %v875_v1, %s804_s11  ;;  %179 = vrot.lane.b32.xlu0 %v866_v0, %s804_s11 }
  0x50   :  { %185 = vrot.lane.b32.xlu1 %v884_v2, %s804_s11  ;;  %183 = vrot.lane.b32.xlu0 %v893_v3, %s804_s11 }
  0x86   :  { %v102_v7 = vpop.permute.xlu1 %101  ;;  %v87_v8 = vpop.permute.xlu0 %86 }
  0x8a   :  { %v104_v11 = vpop.permute.xlu1 %103  ;;  %v89_v12 = vpop.permute.xlu0 %88 }
  0x8b   :  { %v112_v13 = vsel %vm109_vm0, %v102_v7, %v104_v11  ;;  %v99_v14 = vsel %vm96_vm1, %v87_v8, %v89_v12 }
  0x8c   :  { %v193_v15 = vmul.f32 %v99_v14, %v955_v9  ;;  %v197_v16 = vmul.f32 %v112_v13, %v957_v10 }
  0x8e   :  { %v108_v19 = vpop.permute.xlu1 %107  ;;  %v93_v20 = vpop.permute.xlu0 %92  ;;  %v229_v21 = vpack.c.bf16 %v197_v16, %v193_v15 }
  0x8f   :  { %v113_v22 = vsel %vm109_vm0, %v108_v19, %v102_v7  ;;  %v100_v23 = vsel %vm96_vm1, %v93_v20, %v87_v8  ;;  %v1023_v7 = vld [vmem:[#allocation2 + $0x58] sm:$0xff] }
  0x90   :  { %v196_v24 = vmul.f32 %v113_v22, %v965_v17  ;;  %v192_v25 = vmul.f32 %v100_v23, %v967_v18  ;;  %265 = vmatprep.subr.bf16.mxu0 %v229_v21 }
  0x92   :  { %v106_v30 = vpop.permute.xlu1 %105  ;;  %v91_v31 = vpop.permute.xlu0 %90  ;;  %v228_v32 = vpack.c.bf16 %v196_v24, %v192_v25  ;;  %v1040_v24 = vld [vmem:[#allocation2 + $0xa8] sm:$0xff] }
  0x93   :  { %v110_v33 = vsel %vm109_vm0, %v106_v30, %v108_v19  ;;  %v111_v34 = vsel %vm109_vm0, %v104_v11, %v106_v30  ;;  %v97_v35 = vsel %vm96_vm1, %v91_v31, %v93_v20  ;;  %v98_v36 = vsel %vm96_vm1, %v89_v12, %v91_v31  ;;  %v1034_v19 = vld [vmem:[#allocation2 + $0x88] sm:$0xff] }
  0x94   :  { %v198_v37 = vmul.f32 %v111_v34, %v975_v26  ;;  %v194_v38 = vmul.f32 %v98_v36, %v977_v27  ;;  %266 = vmatpush1.bf16.msra.mxu0 %v228_v32  ;;  %v195_v39 = vmul.f32 %v97_v35, %v979_v28  ;;  %v199_v40 = vmul.f32 %v110_v33, %v981_v29  ;;  %v1046_v35 = vld [vmem:[#allocation2 + $0x80] sm:$0xff]  ;;  %v1048_v36 = vld [vmem:[#allocation2 + $0x98] sm:$0xff] }
  0x95   :  { %v209_v33 = vmul.f32 %v1034_v19, %v875_v1 }
  0x96   :  { %v117_v41 = vpop.permute.xlu1 %116  ;;  %v115_v42 = vpop.permute.xlu0 %114  ;;  %v231_v43 = vpack.c.bf16 %v199_v40, %v195_v39  ;;  %v230_v44 = vpack.c.bf16 %v198_v37, %v194_v38  ;;  %v1050_v37 = vld [vmem:[#allocation2 + $0x90] sm:$0xff]  ;;  %v1055_v40 = vld [vmem:[#allocation2 + $0xa0] sm:$0xff] }
  0x97   :  { %v125_v46 = vsel %vm122_vm2, %v115_v42, %v117_v41  ;;  %v1053_v39 = vld [vmem:[#allocation2 + $0xb0] sm:$0xff] }
  0x98   :  { %306 = vmatprep.subr.bf16.mxu1 %v231_v43  ;;  %v201_v51 = vmul.f32 %v125_v46, %v997_v45  ;;  %v211_v46 = vmul.f32 %v1048_v36, %v884_v2 }
  0x99   :  { %307 = vmatpush1.bf16.msra.mxu1 %v230_v44  ;;  %v208_v44 = vmul.f32 %v1046_v35, %v866_v0 }
  0x9a   :  { %v130_v48 = vpop.permute.xlu1 %129  ;;  %v128_v49 = vpop.permute.xlu0 %127 }
  0x9b   :  { %v138_v50 = vsel %vm135_vm3, %v128_v49, %v130_v48 }
  0x9c   :  { %v205_v52 = vmul.f32 %v138_v50, %v1001_v47 }
  0x9e   :  { %v134_v55 = vpop.permute.xlu1 %133  ;;  %v121_v56 = vpop.permute.xlu0 %120  ;;  %v233_v57 = vpack.c.bf16 %v205_v52, %v201_v51 }
  0x9f   :  { %v139_v58 = vsel %vm135_vm3, %v134_v55, %v128_v49  ;;  %v126_v59 = vsel %vm122_vm2, %v121_v56, %v115_v42 }
  0xa0   :  { %v204_v60 = vmul.f32 %v139_v58, %v1007_v53  ;;  %v200_v61 = vmul.f32 %v126_v59, %v1009_v54  ;;  %267 = vmatprep.subr.bf16.mxu0 %v233_v57 }
  0xa2   :  { %v132_v8 = vpop.permute.xlu1 %131  ;;  %v119_v11 = vpop.permute.xlu0 %118  ;;  %v232_v12 = vpack.c.bf16 %v204_v60, %v200_v61  ;;  %v1076_v60 = vld [vmem:[#allocation2 + $0xc8] sm:$0xff] }
  0xa3   :  { %v136_v13 = vsel %vm135_vm3, %v132_v8, %v134_v55  ;;  %v137_v14 = vsel %vm135_vm3, %v130_v48, %v132_v8  ;;  %v123_v15 = vsel %vm122_vm2, %v119_v11, %v121_v56  ;;  %v124_v16 = vsel %vm122_vm2, %v117_v41, %v119_v11  ;;  %v1057_v41 = vld [vmem:[#allocation2 + $0xb8] sm:$0xff]  ;;  %v1080_v8 = vld [vmem:[#allocation2 + $0xe8] sm:$0xff] }
  0xa4   :  { %v206_v20 = vmul.f32 %v137_v14, %v1017_v62  ;;  %v207_v21 = vmul.f32 %v136_v13, %v1019_v63  ;;  %v202_v22 = vmul.f32 %v124_v16, %v1021_v5  ;;  %v203_v23 = vmul.f32 %v123_v15, %v1023_v7  ;;  %268 = vmatpush1.bf16.msra.mxu0 %v232_v12  ;;  %v1086_v16 = vld [vmem:[#allocation2 + $0xe0] sm:$0xff] }
  0xa5   :  { %v210_v48 = vmul.f32 %v1050_v37, %v893_v3 }
  0xa6   :  { %v145_v25 = vpop.permute.xlu1 %144  ;;  %v143_v30 = vpop.permute.xlu0 %142  ;;  %v235_v31 = vpack.c.bf16 %v207_v21, %v203_v23  ;;  %v234_v32 = vpack.c.bf16 %v206_v20, %v202_v22  ;;  %v1088_v20 = vld [vmem:[#allocation2 + $0xc0] sm:$0xff] }
  0xa7   :  { %v150_v34 = vsel %vm148_vm4, %v143_v30, %v145_v25 }
  0xa8   :  { %v213_v38 = vmul.f32 %v150_v34, %v1040_v24  ;;  %308 = vmatprep.subr.bf16.mxu1 %v235_v31  ;;  %v1098_v34 = vld [vmem:[#allocation2 + $0xf8] sm:$0xff] }
  0xa9   :  { %309 = vmatpush1.bf16.msra.mxu1 %v234_v32 }
  0xaa   :  { %v147_v1 = vpop.permute.xlu1 %146  ;;  %v141_v42 = vpop.permute.xlu0 %140  ;;  %v237_v43 = vpack.c.bf16 %v213_v38, %v209_v33  ;;  %v1096_v33 = vld [vmem:[#allocation2 + $0xf0] sm:$0xff] }
  0xab   :  { %v149_v49 = vsel %vm148_vm4, %v145_v25, %v147_v1  ;;  %v151_v50 = vsel %vm148_vm4, %v141_v42, %v143_v30  ;;  %v152_v51 = vsel %vm148_vm4, %v147_v1, %v141_v42  ;;  %v1100_v38 = vld [vmem:[#allocation2 + $0xd0] sm:$0xff]  ;;  %v1102_v1 = vld [vmem:[#allocation2 + $0xd8] sm:$0xff] }
  0xac   :  { %v214_v52 = vmul.f32 %v149_v49, %v1053_v39  ;;  %v212_v55 = vmul.f32 %v151_v50, %v1055_v40  ;;  %v215_v0 = vmul.f32 %v152_v51, %v1057_v41  ;;  %269 = vmatprep.subr.bf16.mxu0 %v237_v43 }
  0xae   :  { %v158_v2 = vpop.permute.xlu1 %157  ;;  %v156_v56 = vpop.permute.xlu0 %155  ;;  %v236_v57 = vpack.c.bf16 %v212_v55, %v208_v44  ;;  %v239_v58 = vpack.c.bf16 %v215_v0, %v211_v46  ;;  %v238_v59 = vpack.c.bf16 %v214_v52, %v210_v48 }
  0xaf   :  { %v163_v61 = vsel %vm161_vm5, %v156_v56, %v158_v2 }
  0xb0   :  { %270 = vmatpush1.bf16.msra.mxu0 %v236_v57  ;;  %310 = vmatprep.subr.bf16.mxu1 %v239_v58  ;;  %v217_v14 = vmul.f32 %v163_v61, %v1076_v60 }
  0xb1   :  { %311 = vmatpush1.bf16.msra.mxu1 %v238_v59 }
  0xb2   :  { %v171_v11 = vpop.permute.xlu1 %170  ;;  %v169_v12 = vpop.permute.xlu0 %168 }
  0xb3   :  { %v176_v13 = vsel %vm174_vm6, %v169_v12, %v171_v11 }
  0xb4   :  { %v221_v15 = vmul.f32 %v176_v13, %v1080_v8  ;;  %v1124_v13 = vld [vmem:[#allocation2 + $0x108] sm:$0xff] }
  0xb6   :  { %v167_v21 = vpop.permute.xlu1 %166  ;;  %v154_v22 = vpop.permute.xlu0 %153  ;;  %v241_v23 = vpack.c.bf16 %v221_v15, %v217_v14  ;;  %v1126_v14 = vld [vmem:[#allocation2 + $0x110] sm:$0xff] }
  0xb7   :  { %v177_v25 = vsel %vm174_vm6, %v167_v21, %v169_v12  ;;  %v164_v30 = vsel %vm161_vm5, %v154_v22, %v156_v56  ;;  %v1117_v56 = vld [vmem:[#allocation2 + $0x100] sm:$0xff]  ;;  %v1122_v12 = vld [vmem:[#allocation2 + $0x118] sm:$0xff] }
  0xb8   :  { %v220_v31 = vmul.f32 %v177_v25, %v1086_v16  ;;  %v216_v32 = vmul.f32 %v164_v30, %v1088_v20  ;;  %271 = vmatprep.subr.bf16.mxu0 %v241_v23 }
  0xba   :  { %v173_v42 = vpop.permute.xlu1 %172  ;;  %v160_v43 = vpop.permute.xlu0 %159  ;;  %v240_v44 = vpack.c.bf16 %v220_v31, %v216_v32 }
  0xbb   :  { %v175_v46 = vsel %vm174_vm6, %v171_v11, %v173_v42  ;;  %v178_v48 = vsel %vm174_vm6, %v173_v42, %v167_v21  ;;  %v162_v49 = vsel %vm161_vm5, %v158_v2, %v160_v43  ;;  %v165_v50 = vsel %vm161_vm5, %v160_v43, %v154_v22 }
  0xbc   :  { %v222_v51 = vmul.f32 %v175_v46, %v1096_v33  ;;  %v223_v52 = vmul.f32 %v178_v48, %v1098_v34  ;;  %v218_v55 = vmul.f32 %v162_v49, %v1100_v38  ;;  %v219_v0 = vmul.f32 %v165_v50, %v1102_v1  ;;  %272 = vmatpush1.bf16.msra.mxu0 %v240_v44  ;;  %v85_v50 = vld [vmem:[%s1369_s2] sm:$0xf] }
  0xbe   :  { %v182_v57 = vpop.permute.xlu1 %181  ;;  %v180_v58 = vpop.permute.xlu0 %179  ;;  %v243_v59 = vpack.c.bf16 %v223_v52, %v219_v0  ;;  %v242_v61 = vpack.c.bf16 %v222_v51, %v218_v55 }
  0xbf   :  { %v190_v2 = vsel %vm187_vm7, %v180_v58, %v182_v57 }
  0xc0   :  { %v224_v11 = vmul.f32 %v190_v2, %v1117_v56  ;;  %312 = vmatprep.subr.bf16.mxu1 %v243_v59 }
  0xc1   :  { %313 = vmatpush1.bf16.msra.mxu1 %v242_v61 }
  0xc2   :  { %v186_v15 = vpop.permute.xlu1 %185  ;;  %v184_v21 = vpop.permute.xlu0 %183  ;;  %v244_v30 = vpack.c.bf16 %v224_v11, %v224_v11 }
  0xc3   :  { %v191_v22 = vsel %vm187_vm7, %v186_v15, %v180_v58  ;;  %v188_v23 = vsel %vm187_vm7, %v184_v21, %v186_v15  ;;  %v189_v25 = vsel %vm187_vm7, %v182_v57, %v184_v21 }
  0xc4   :  { %v227_v31 = vmul.f32 %v191_v22, %v1122_v12  ;;  %v225_v32 = vmul.f32 %v189_v25, %v1124_v13  ;;  %v226_v42 = vmul.f32 %v188_v23, %v1126_v14  ;;  %v254_v48 = vsel %vm252_vm8, %v244_v30, 0 }
  0xc6   :  { %v247_v43 = vpack.c.bf16 %v227_v31, %v227_v31  ;;  %v245_v44 = vpack.c.bf16 %v225_v32, %v225_v32  ;;  %v246_v46 = vpack.c.bf16 %v226_v42, %v226_v42 }
  0xc8   :  { %715 = vmatprep.subr.msk.bf16.mxu0 %vm252_vm8, %v245_v44  ;;  %717 = vmatprep.subr.msk.bf16.mxu1 %vm252_vm8, %v247_v43  ;;  %v260_v49 = vsel %vm252_vm8, %v246_v46, 0 }
  0xc9   :  { %274 = vmatpush1.bf16.msra.mxu0 %v254_v48  ;;  %315 = vmatpush1.bf16.msra.mxu1 %v260_v49  ;;  %v348_v49 = vld [vmem:[%s1371_s4] sm:$0xff] }
  0xcc   :  { %716 = vmatmul.mubr.msk.bf16.vlgmr.msra.gmra.mrb[0].mxu0 %vm248_vm9, %v85_v50  ;;  %718 = vmatmul.mubr.msk.bf16.vlgmr.msra.gmra.mrb[0].mxu1 %vm248_vm9, %v85_v50 }
  0xcd   :  { %595 = vmatprep.mubr.bf16.mxu0 %v803_v4  ;;  %636 = vmatprep.mubr.bf16.mxu1 %v803_v4 }
 0x19f   :  { %v299_v51 = vpop.f32.mrb[0].mxu0  ;;  %v340_v52 = vpop.f32.mrb[0].mxu1 }
 0x1a0   :  { %v301_v55 = vpop.f32.mrb[1].mxu0  ;;  %v342_v0 = vpop.f32.mrb[1].mxu1 }
 0x1a1   :  { %v349_v57 = vadd.f32 %v301_v55, %v299_v51  ;;  %v303_v58 = vpop.f32.mrb[2].mxu0  ;;  %v344_v59 = vpop.f32.mrb[2].mxu1 }
 0x1a2   :  { %v304_v61 = vpop.f32.mrb[3].mxu0  ;;  %v345_v2 = vpop.f32.mrb[3].mxu1 }
 0x1a3   :  { %v350_v11 = vadd.f32 %v349_v57, %v340_v52 }
 0x1a5   :  { %v351_v15 = vadd.f32 %v350_v11, %v342_v0 }
 0x1a7   :  { %352 = vadd.xlane.f32.xlu0 %v351_v15 }
 0x234   :  { %v353_v21 = vpop.xlane.xlu0 %352 }
 0x235   :  { %v355_v22 = vmul.f32 0.001953125, %v353_v21 }
 0x237   :  { %v356_v23 = vsub.f32 %v299_v51, %v355_v22  ;;  %v357_v25 = vsub.f32 %v301_v55, %v355_v22  ;;  %v358_v30 = vsub.f32 %v340_v52, %v355_v22  ;;  %v359_v31 = vsub.f32 %v342_v0, %v355_v22  ;;  %v347_v51 = vld [vmem:[%s1370_s3] sm:$0xff] }
 0x239   :  { %v360_v32 = vmul.f32 %v356_v23, %v356_v23  ;;  %v361_v4 = vmul.f32 %v357_v25, %v357_v25  ;;  %v362_v42 = vmul.f32 %v358_v30, %v358_v30  ;;  %v363_v44 = vmul.f32 %v359_v31, %v359_v31 }
 0x23b   :  { %v364_v43 = vadd.f32 %v361_v4, %v360_v32 }
 0x23d   :  { %v365_v46 = vadd.f32 %v364_v43, %v362_v42 }
 0x23f   :  { %v366_v48 = vadd.f32 %v365_v46, %v363_v44 }
 0x241   :  { %367 = vadd.xlane.f32.xlu1 %v366_v48 }
 0x252   :  { %384 = vperm.xlu1 %737, %v348_v49  }
 0x2ce   :  { %v368_v50 = vpop.xlane.xlu1 %367 }
 0x2cf   :  { %v369_v57 = vmul.f32 0.001953125, %v368_v50 }
 0x2d1   :  { %v370_v58 = vadd.f32 1e-05, %v369_v57 }
 0x2d2   :  { %v385_v59 = vpop.permute.xlu1 %384 }
 0x2d3   :  { %738 = vrsqrt.f32 %v370_v58 }
 0x2dd   :  { %v739_v52 = vpop.eup %738 }
 0x2de   :  { %v372_v55 = vmul.f32 %v739_v52, %v347_v51 }
 0x2e0   :  { %375 = vperm.xlu0 %736, %v372_v55  }
 0x35f   :  { %v376_v0 = vpop.permute.xlu0 %375 }
 0x360   :  { %v378_v61 = vmul.f32 %v376_v0, %v356_v23  ;;  %v379_v2 = vmul.f32 %v376_v0, %v357_v25  ;;  %v380_v11 = vmul.f32 %v376_v0, %v358_v30  ;;  %v381_v42 = vmul.f32 %v376_v0, %v359_v31 }
 0x362   :  { %v387_v15 = vadd.f32 %v385_v59, %v378_v61  ;;  %v389_v21 = vadd.f32 %v385_v59, %v380_v11  ;;  %v388_v22 = vadd.f32 %v385_v59, %v379_v2  ;;  %v390_v23 = vadd.f32 %v385_v59, %v381_v42 }
 0x364   :  { %v1154_v32 = vmax.f32 %v387_v15, 0.0  ;;  %v1156_v4 = vmax.f32 %v389_v21, 0.0  ;;  %v1162_v43 = vmax.f32 %v388_v22, 0.0  ;;  %v1172_v25 = vmax.f32 %v390_v23, 0.0 }
 0x366   :  { %400 = vrot.lane.b32.xlu0 %v1156_v4, %s797_s22  ;;  %396 = vrot.lane.b32.xlu1 %v1154_v32, %s797_s22 }
 0x36a   :  { %420 = vrot.lane.b32.xlu0 %v1154_v32, %s798_s28  ;;  %398 = vrot.lane.b32.xlu1 %v1162_v43, %s797_s22 }
 0x36e   :  { %432 = vrot.lane.b32.xlu0 %v1154_v32, %s799_s29  ;;  %408 = vrot.lane.b32.xlu1 %v1154_v32, %s796_s21 }
 0x372   :  { %426 = vrot.lane.b32.xlu0 %v1172_v25, %s798_s28  ;;  %410 = vrot.lane.b32.xlu1 %v1162_v43, %s796_s21 }
 0x376   :  { %424 = vrot.lane.b32.xlu0 %v1156_v4, %s798_s28  ;;  %402 = vrot.lane.b32.xlu1 %v1172_v25, %s797_s22 }
 0x37a   :  { %446 = vrot.lane.b32.xlu0 %v1162_v43, %s800_s30  ;;  %414 = vrot.lane.b32.xlu1 %v1172_v25, %s796_s21 }
 0x37e   :  { %444 = vrot.lane.b32.xlu0 %v1154_v32, %s800_s30  ;;  %412 = vrot.lane.b32.xlu1 %v1156_v4, %s796_s21 }
 0x382   :  { %458 = vrot.lane.b32.xlu0 %v1162_v43, %s801_s9  ;;  %422 = vrot.lane.b32.xlu1 %v1162_v43, %s798_s28 }
 0x386   :  { %470 = vrot.lane.b32.xlu0 %v1162_v43, %s802_s10  ;;  %434 = vrot.lane.b32.xlu1 %v1162_v43, %s799_s29 }
 0x38a   :  { %456 = vrot.lane.b32.xlu0 %v1154_v32, %s801_s9  ;;  %438 = vrot.lane.b32.xlu1 %v1172_v25, %s799_s29 }
 0x38e   :  { %462 = vrot.lane.b32.xlu0 %v1172_v25, %s801_s9  ;;  %436 = vrot.lane.b32.xlu1 %v1156_v4, %s799_s29 }
 0x392   :  { %480 = vrot.lane.b32.xlu0 %v1154_v32, %s804_s11  ;;  %448 = vrot.lane.b32.xlu1 %v1156_v4, %s800_s30 }
 0x396   :  { %484 = vrot.lane.b32.xlu0 %v1156_v4, %s804_s11  ;;  %450 = vrot.lane.b32.xlu1 %v1172_v25, %s800_s30 }
 0x39a   :  { %460 = vrot.lane.b32.xlu1 %v1156_v4, %s801_s9 }
 0x39e   :  { %472 = vrot.lane.b32.xlu1 %v1156_v4, %s802_s10 }
 0x3a2   :  { %468 = vrot.lane.b32.xlu1 %v1154_v32, %s802_s10 }
 0x3a6   :  { %474 = vrot.lane.b32.xlu1 %v1172_v25, %s802_s10 }
 0x3aa   :  { %482 = vrot.lane.b32.xlu1 %v1162_v43, %s804_s11 }
 0x3ae   :  { %486 = vrot.lane.b32.xlu1 %v1172_v25, %s804_s11 }
 0x3d8   :  { %v401_v30 = vpop.permute.xlu0 %400  ;;  %v397_v31 = vpop.permute.xlu1 %396 }
 0x3dc   :  { %v421_v44 = vpop.permute.xlu0 %420  ;;  %v399_v46 = vpop.permute.xlu1 %398 }
 0x3dd   :  { %v406_v50 = vsel %vm96_vm1, %v397_v31, %v399_v46 }
 0x3de   :  { %v493_v51 = vmul.f32 %v406_v50, %v955_v9  ;;  %v405_v9 = vsel %vm96_vm1, %v399_v46, %v401_v30 }
 0x3e0   :  { %v433_v48 = vpop.permute.xlu0 %432  ;;  %v409_v49 = vpop.permute.xlu1 %408 }
 0x3e4   :  { %v411_v57 = vpop.permute.xlu1 %410  ;;  %v427_v52 = vpop.permute.xlu0 %426 }
 0x3e5   :  { %v418_v58 = vsel %vm109_vm0, %v409_v49, %v411_v57 }
 0x3e6   :  { %v497_v55 = vmul.f32 %v418_v58, %v957_v10 }
 0x3e8   :  { %v403_v0 = vpop.permute.xlu1 %402  ;;  %v529_v59 = vpack.c.bf16 %v497_v55, %v493_v51  ;;  %v425_v2 = vpop.permute.xlu0 %424 }
 0x3e9   :  { %v407_v61 = vsel %vm96_vm1, %v403_v0, %v397_v31  ;;  %v404_v10 = vsel %vm96_vm1, %v401_v30, %v403_v0 }
 0x3ea   :  { %563 = vmatprep.subr.bf16.mxu0 %v529_v59  ;;  %v492_v21 = vmul.f32 %v407_v61, %v967_v18  ;;  %v495_v18 = vmul.f32 %v404_v10, %v979_v28 }
 0x3ec   :  { %v415_v11 = vpop.permute.xlu1 %414  ;;  %v447_v58 = vpop.permute.xlu0 %446 }
 0x3ed   :  { %v419_v15 = vsel %vm109_vm0, %v415_v11, %v409_v49  ;;  %v494_v49 = vmul.f32 %v405_v9, %v977_v27 }
 0x3ee   :  { %v496_v22 = vmul.f32 %v419_v15, %v965_v17 }
 0x3f0   :  { %v528_v42 = vpack.c.bf16 %v496_v22, %v492_v21  ;;  %v413_v23 = vpop.permute.xlu1 %412  ;;  %v445_v59 = vpop.permute.xlu0 %444  ;;  %v428_v22 = vsel %vm122_vm2, %v425_v2, %v427_v52 }
 0x3f1   :  { %v416_v31 = vsel %vm109_vm0, %v413_v23, %v415_v11  ;;  %v417_v50 = vsel %vm109_vm0, %v411_v57, %v413_v23 }
 0x3f2   :  { %v498_v17 = vmul.f32 %v417_v50, %v975_v26  ;;  %v499_v46 = vmul.f32 %v416_v31, %v981_v29  ;;  %564 = vmatpush1.bf16.msra.mxu0 %v528_v42  ;;  %v431_v29 = vsel %vm122_vm2, %v427_v52, %v421_v44 }
 0x3f3   :  { %v500_v21 = vmul.f32 %v431_v29, %v1009_v54 }
 0x3f4   :  { %v530_v51 = vpack.c.bf16 %v498_v17, %v494_v49  ;;  %v423_v30 = vpop.permute.xlu1 %422  ;;  %v531_v55 = vpack.c.bf16 %v499_v46, %v495_v18  ;;  %v459_v9 = vpop.permute.xlu0 %458 }
 0x3f5   :  { %v430_v0 = vsel %vm122_vm2, %v421_v44, %v423_v30  ;;  %v503_v44 = vmul.f32 %v428_v22, %v1023_v7 }
 0x3f6   :  { %604 = vmatprep.subr.bf16.mxu1 %v531_v55  ;;  %v501_v28 = vmul.f32 %v430_v0, %v997_v45  ;;  %v429_v45 = vsel %vm122_vm2, %v423_v30, %v425_v2 }
 0x3f7   :  { %605 = vmatpush1.bf16.msra.mxu1 %v530_v51  ;;  %v502_v52 = vmul.f32 %v429_v45, %v1021_v5  ;;  %v509_v5 = vmul.f32 %v1162_v43, %v1034_v19 }
 0x3f8   :  { %v435_v57 = vpop.permute.xlu1 %434  ;;  %v471_v2 = vpop.permute.xlu0 %470 }
 0x3f9   :  { %v442_v27 = vsel %vm135_vm3, %v433_v48, %v435_v57 }
 0x3fa   :  { %v505_v26 = vmul.f32 %v442_v27, %v1001_v47 }
 0x3fc   :  { %v439_v61 = vpop.permute.xlu1 %438  ;;  %v533_v11 = vpack.c.bf16 %v505_v26, %v501_v28 }
 0x3fd   :  { %v443_v15 = vsel %vm135_vm3, %v439_v61, %v433_v48  ;;  %v454_v48 = vsel %vm148_vm4, %v445_v59, %v447_v58 }
 0x3fe   :  { %v504_v10 = vmul.f32 %v443_v15, %v1007_v53  ;;  %565 = vmatprep.subr.bf16.mxu0 %v533_v11  ;;  %v512_v18 = vmul.f32 %v454_v48, %v1055_v40 }
 0x400   :  { %v532_v47 = vpack.c.bf16 %v504_v10, %v500_v21  ;;  %v437_v42 = vpop.permute.xlu1 %436 }
 0x401   :  { %v440_v23 = vsel %vm135_vm3, %v437_v42, %v439_v61  ;;  %v441_v54 = vsel %vm135_vm3, %v435_v57, %v437_v42 }
 0x402   :  { %v506_v53 = vmul.f32 %v441_v54, %v1017_v62  ;;  %v507_v31 = vmul.f32 %v440_v23, %v1019_v63  ;;  %566 = vmatpush1.bf16.msra.mxu0 %v532_v47  ;;  %v508_v62 = vmul.f32 %v1154_v32, %v1046_v35  ;;  %v511_v35 = vmul.f32 %v1172_v25, %v1048_v36 }
 0x404   :  { %v534_v50 = vpack.c.bf16 %v506_v53, %v502_v52  ;;  %v449_v49 = vpop.permute.xlu1 %448  ;;  %v535_v7 = vpack.c.bf16 %v507_v31, %v503_v44  ;;  %v536_v30 = vpack.c.bf16 %v512_v18, %v508_v62 }
 0x405   :  { %v453_v17 = vsel %vm148_vm4, %v447_v58, %v449_v49  ;;  %v457_v58 = vpop.permute.xlu0 %456 }
 0x406   :  { %v513_v46 = vmul.f32 %v453_v17, %v1040_v24  ;;  %606 = vmatprep.subr.bf16.mxu1 %v535_v7  ;;  %v510_v24 = vmul.f32 %v1156_v4, %v1050_v37  ;;  %v466_v36 = vsel %vm161_vm5, %v457_v58, %v459_v9 }
 0x407   :  { %607 = vmatpush1.bf16.msra.mxu1 %v534_v50  ;;  %v516_v29 = vmul.f32 %v466_v36, %v1088_v20 }
 0x408   :  { %v451_v63 = vpop.permute.xlu1 %450  ;;  %v537_v51 = vpack.c.bf16 %v513_v46, %v509_v5 }
 0x409   :  { %v452_v55 = vsel %vm148_vm4, %v449_v49, %v451_v63  ;;  %v455_v40 = vsel %vm148_vm4, %v451_v63, %v445_v59  ;;  %v463_v27 = vpop.permute.xlu0 %462 }
 0x40a   :  { %v514_v0 = vmul.f32 %v452_v55, %v1053_v39  ;;  %v515_v19 = vmul.f32 %v455_v40, %v1057_v41  ;;  %567 = vmatprep.subr.bf16.mxu0 %v537_v51  ;;  %v467_v15 = vsel %vm161_vm5, %v463_v27, %v457_v58 }
 0x40b   :  { %568 = vmatpush1.bf16.msra.mxu0 %v536_v30  ;;  %v519_v20 = vmul.f32 %v467_v15, %v1102_v1 }
 0x40c   :  { %v538_v32 = vpack.c.bf16 %v514_v0, %v510_v24  ;;  %v461_v43 = vpop.permute.xlu1 %460  ;;  %v539_v57 = vpack.c.bf16 %v515_v19, %v511_v35 }
 0x40d   :  { %v465_v59 = vsel %vm161_vm5, %v459_v9, %v461_v43  ;;  %v481_v61 = vpop.permute.xlu0 %480 }
 0x40e   :  { %608 = vmatprep.subr.bf16.mxu1 %v539_v57  ;;  %v517_v39 = vmul.f32 %v465_v59, %v1076_v60  ;;  %v464_v60 = vsel %vm161_vm5, %v461_v43, %v463_v27 }
 0x40f   :  { %609 = vmatpush1.bf16.msra.mxu1 %v538_v32  ;;  %v518_v10 = vmul.f32 %v464_v60, %v1100_v38 }
 0x410   :  { %v473_v28 = vpop.permute.xlu1 %472 }
 0x411   :  { %v477_v37 = vsel %vm174_vm6, %v471_v2, %v473_v28  ;;  %v485_v47 = vpop.permute.xlu0 %484 }
 0x412   :  { %v521_v41 = vmul.f32 %v477_v37, %v1080_v8 }
 0x414   :  { %v469_v4 = vpop.permute.xlu1 %468  ;;  %v541_v25 = vpack.c.bf16 %v521_v41, %v517_v39  ;;  %v646_v39 = vld [vmem:[%s1374_s7] sm:$0xff]  ;;  %s805_s7 = smov [#allocation5]  }
 0x415   :  { %v478_v26 = vsel %vm174_vm6, %v469_v4, %v471_v2  ;;  %s706_s20 = sshll.u32 %s805_s7, 4  ;;  %s707_s20 = int_to_ptr.vmem [resolvable:$true] %s706_s20 }
 0x416   :  { %v520_v11 = vmul.f32 %v478_v26, %v1086_v16  ;;  %569 = vmatprep.subr.bf16.mxu0 %v541_v25  ;;  %v645_v25 = vld [vmem:[%s1373_s6] sm:$0xff]  ;;  %s767_s25 = scalar_lea.vmem %s707_s20, 512  ;;  %p772_p9 = scmp.lt.s32.totalorder %s707_s20, %s707_s20 }
 0x417   :  { %p768_p8 = scmp.ne.s32.totalorder %s707_s20, %s767_s25  ;;  %p773_p10 = scmp.lt.s32.totalorder %s767_s25, %s767_s25 }
 0x418   :  { %v540_v8 = vpack.c.bf16 %v520_v11, %v516_v29  ;;  %v475_v21 = vpop.permute.xlu1 %474 }
 0x419   :  { %v476_v22 = vsel %vm174_vm6, %v473_v28, %v475_v21  ;;  %v479_v9 = vsel %vm174_vm6, %v475_v21, %v469_v4  ;;  %p774_p11 = por %p773_p10, %p772_p9 }
 0x41a   :  { %v522_v16 = vmul.f32 %v476_v22, %v1096_v33  ;;  %v523_v45 = vmul.f32 %v479_v9, %v1098_v34  ;;  %570 = vmatpush1.bf16.msra.mxu0 %v540_v8 }
 0x41b   :  { %p775_p12 = pnand %p774_p11, %p768_p8 }
 0x41c   :  { %v542_v42 = vpack.c.bf16 %v522_v16, %v518_v10  ;;  %v483_v44 = vpop.permute.xlu1 %482  ;;  %v543_v23 = vpack.c.bf16 %v523_v45, %v519_v20  ;;  %v742_v16 = vld [vmem:[%s1367_s0] sm:$0xff] }
 0x41d   :  { %v489_v54 = vsel %vm187_vm7, %v483_v44, %v485_v47  ;;  %v490_v48 = vsel %vm187_vm7, %v481_v61, %v483_v44 }
 0x41e   :  { %v524_v52 = vmul.f32 %v490_v48, %v1117_v56  ;;  %v525_v1 = vmul.f32 %v489_v54, %v1124_v13  ;;  %610 = vmatprep.subr.bf16.mxu1 %v543_v23  ;;  %v395_v13 = vld [vmem:[%s1372_s5] sm:$0xf]  ;;  %v744_v23 = vld [vmem:[%s1367_s0 + $0x18] sm:$0xff] }
 0x41f   :  { %611 = vmatpush1.bf16.msra.mxu1 %v542_v42 }
 0x420   :  { %v544_v33 = vpack.c.bf16 %v524_v52, %v524_v52  ;;  %v545_v38 = vpack.c.bf16 %v525_v1, %v525_v1  ;;  %v487_v34 = vpop.permute.xlu1 %486 }
 0x421   :  { %v488_v53 = vsel %vm187_vm7, %v485_v47, %v487_v34  ;;  %v491_v31 = vsel %vm187_vm7, %v487_v34, %v481_v61  ;;  %v743_v47 = vld [vmem:[%s1367_s0 + $0x8] sm:$0xff] }
 0x422   :  { %v526_v2 = vmul.f32 %v488_v53, %v1126_v14  ;;  %v527_v50 = vmul.f32 %v491_v31, %v1122_v12  ;;  %719 = vmatprep.subr.msk.bf16.mxu0 %vm252_vm8, %v545_v38  ;;  %v552_v56 = vsel %vm252_vm8, %v544_v33, 0 }
 0x423   :  { %572 = vmatpush1.bf16.msra.mxu0 %v552_v56 }
 0x424   :  { %v546_v49 = vpack.c.bf16 %v526_v2, %v526_v2  ;;  %v547_v7 = vpack.c.bf16 %v527_v50, %v527_v50 }
 0x426   :  { %720 = vmatmul.mubr.msk.bf16.vlgmr.msra.gmra.mrb[4].mxu0 %vm248_vm9, %v395_v13  ;;  %721 = vmatprep.subr.msk.bf16.mxu1 %vm252_vm8, %v547_v7  ;;  %v558_v6 = vsel %vm252_vm8, %v546_v49, 0 }
 0x427   :  { %613 = vmatpush1.bf16.msra.mxu1 %v558_v6 }
 0x42a   :  { %722 = vmatmul.mubr.msk.bf16.vlgmr.msra.gmra.mrb[4].mxu1 %vm248_vm9, %v395_v13 }
 0x4f9   :  { %v597_v12 = vpop.f32.mrb[4].mxu0 }
 0x4fa   :  { %v599_v14 = vpop.f32.mrb[5].mxu0 }
 0x4fb   :  { %v647_v18 = vadd.f32 %v599_v14, %v597_v12  ;;  %v601_v17 = vpop.f32.mrb[6].mxu0 }
 0x4fc   :  { %v602_v46 = vpop.f32.mrb[7].mxu0 }
 0x4fd   :  { %v638_v5 = vpop.f32.mrb[4].mxu1 }
 0x4fe   :  { %v648_v62 = vadd.f32 %v647_v18, %v638_v5  ;;  %v640_v63 = vpop.f32.mrb[5].mxu1 }
 0x4ff   :  { %v642_v51 = vpop.f32.mrb[6].mxu1 }
 0x500   :  { %v643_v30 = vpop.f32.mrb[7].mxu1  ;;  %v649_v55 = vadd.f32 %v648_v62, %v640_v63 }
 0x502   :  { %650 = vadd.xlane.f32.xlu0 %v649_v55 }
 0x58f   :  { %v651_v40 = vpop.xlane.xlu0 %650 }
 0x590   :  { %v652_v58 = vmul.f32 0.001953125, %v651_v40 }
 0x592   :  { %v653_v24 = vsub.f32 %v597_v12, %v652_v58  ;;  %v654_v0 = vsub.f32 %v599_v14, %v652_v58  ;;  %v655_v19 = vsub.f32 %v638_v5, %v652_v58  ;;  %v656_v35 = vsub.f32 %v640_v63, %v652_v58 }
 0x594   :  { %v657_v32 = vmul.f32 %v653_v24, %v653_v24  ;;  %v658_v43 = vmul.f32 %v654_v0, %v654_v0  ;;  %v659_v57 = vmul.f32 %v655_v19, %v655_v19  ;;  %v660_v27 = vmul.f32 %v656_v35, %v656_v35 }
 0x596   :  { %v661_v59 = vadd.f32 %v658_v43, %v657_v32 }
 0x598   :  { %v662_v28 = vadd.f32 %v661_v59, %v659_v57 }
 0x59a   :  { %v663_v37 = vadd.f32 %v662_v28, %v660_v27 }
 0x59c   :  { %664 = vadd.xlane.f32.xlu1 %v663_v37 }
 0x5ad   :  { %681 = vperm.xlu1 %737, %v646_v39  }
 0x629   :  { %v665_v41 = vpop.xlane.xlu1 %664 }
 0x62a   :  { %v666_v36 = vmul.f32 0.001953125, %v665_v41 }
 0x62c   :  { %v667_v4 = vadd.f32 1e-05, %v666_v36 }
 0x62d   :  { %v682_v21 = vpop.permute.xlu1 %681 }
 0x62e   :  { %740 = vrsqrt.f32 %v667_v4 }
 0x638   :  { %v741_v26 = vpop.eup %740 }
 0x639   :  { %v669_v29 = vmul.f32 %v741_v26, %v645_v25 }
 0x63b   :  { %672 = vperm.xlu0 %736, %v669_v29  }
 0x6ba   :  { %v673_v61 = vpop.permute.xlu0 %672 }
 0x6bb   :  { %v675_v11 = vmul.f32 %v673_v61, %v653_v24  ;;  %v676_v15 = vmul.f32 %v673_v61, %v654_v0  ;;  %v677_v60 = vmul.f32 %v673_v61, %v655_v19  ;;  %v678_v8 = vmul.f32 %v673_v61, %v656_v35 }
 0x6bd   :  { %v684_v22 = vadd.f32 %v682_v21, %v675_v11  ;;  %v685_v9 = vadd.f32 %v682_v21, %v676_v15  ;;  %v686_v20 = vadd.f32 %v682_v21, %v677_v60  ;;  %v687_v10 = vadd.f32 %v682_v21, %v678_v8 }
 0x6bf   :  { %v688_v45 = vadd.f32 %v742_v16, %v684_v22  ;;  %v689_v42 = vadd.f32 %v743_v47, %v685_v9  ;;  %v690_v44 = vadd.f32 %v686_v20, %v893_v3  ;;  %v691_v54 = vadd.f32 %v744_v23, %v687_v10 }
 0x6c1   :  { %v692_v48 = vmax.f32 %v688_v45, 0.0  ;;  %v693_v52 = vmax.f32 %v689_v42, 0.0  ;;  %v694_v1 = vmax.f32 %v690_v44, 0.0  ;;  %v695_v33 = vmax.f32 %v691_v54, 0.0 }
 0x6c3   :  { %696 = vst [vmem:[#allocation5] sm:$0xff] %v692_v48  ;;  %697 = vst [vmem:[#allocation5 + $0x8] sm:$0xff] %v693_v52 }
 0x6c4   :  { %698 = vst [vmem:[#allocation5 + $0x10] sm:$0xff] %v694_v1  ;;  %699 = vst [vmem:[#allocation5 + $0x18] sm:$0xff] %v695_v33 }
 0x6c5   :  { %778 = shalt.err (!%p775_p12)
}
 0x6c6   :  { %s779_s0 = scalar_lea.hbm %s1375_s8, 512 }
 0x6c7   :  { %p780_p13 = scmp.ne.s32.totalorder %s1375_s8, %s779_s0  ;;  %p783_p0 = scmp.lt.u32.totalorder %s779_s0, %s1375_s8 }
 0x6c9   :  { %p785_p1 = pnand %p783_p0, %p780_p13 }
 0x6cb   :  { %788 = shalt.err (!%p785_p1)
}
 0x6cc   :  { %709 = dma.vmem_to_hbm [thread:$0]  %s707_s20, 512, %s1375_s8, [#allocation4]  }
 0x6cd   :  { %791 = dma.done.wait [#allocation4], 512  }
 0x6ce   :  { %792 = vsyncadd [#allocation4], 4294966784 }
 0x6cf   :  { %713 = vsyncpa [#allocation3], 1 }
 0x6d0   :  { %714 = vsyncpa [#allocation4], 1 }

</bundles_post_ra>
